<compile_context>
chip_gen: v5e
topology: v5e:2x2
jax: 0.10.0
libtpu: 0.0.40
codegen_flags: <defaults>
</compile_context>

<pallas_src>
import functools
import math

import jax
import jax.numpy as jnp
from jax.experimental import pallas as pl
from jax.experimental.pallas import tpu as pltpu


def _round_up(v, m):
    return (v + m - 1) // m * m


def _vmem_budget_bytes():
    # Generation-aware budget: ~3/4 of physical VMEM (128 MiB on v5e/v6e,
    # 64 MiB per TC on v7x).  Conservative fallback if the query fails.
    try:
        cap = int(pltpu.get_tpu_info().vmem_capacity_bytes)
    except Exception:
        cap = 64 << 20
    return cap * 3 // 4


def _node_aggr_kernel(z_ref, wz_ref, xb_ref, o_ref, *, compute_dtype):
    # Cast z on-chip (free VPU op; no-op for f32) instead of materializing a
    # cast/padded copy of z in HBM.
    zc = z_ref[...].astype(compute_dtype)
    # (TM, Dz) @ (Dz, TN) on the MXU, f32 accumulation.
    acc = jnp.dot(zc, wz_ref[...], preferred_element_type=jnp.float32)
    # Folded (x @ Wx + b) row broadcasts over the TM rows (VPU), stays f32.
    o_ref[...] = (acc + xb_ref[...]).astype(o_ref.dtype)


def make_node_aggr_mlp(w, b, *, heads, z_dim,
                       compute_dtype=jnp.float32,
                       out_dtype=jnp.float32,
                       block_m=512):
    """Factory: hoists weight preprocessing out of the per-call path.

    w: (Dz+Dx, heads) f32  (torch Linear weight stored as (in, out)),
    b: (heads,) f32.
    Returned forward(z, x) -> (Nz, Nx, heads).
    """
    Dz = z_dim
    Din, H = w.shape
    assert H == heads and b.shape == (H,)
    Dx = Din - Dz

    # Hoisted (per-module, not per-call) weight prep.
    wz = w[:Dz].astype(compute_dtype)      # (Dz, H)  MXU operand
    wx = w[Dz:].astype(jnp.float32)        # (Dx, H)  folded with bias per call
    bf = b.astype(jnp.float32)

    kernel = functools.partial(_node_aggr_kernel, compute_dtype=compute_dtype)

    def forward(z, x):
        Nz, dz = z.shape
        Nx, dx = x.shape
        assert dz == Dz and dx == Dx
        NxH = Nx * H

        # ---- tile sizing --------------------------------------------------
        # >= 2 row tiles so "parallel" can shard across both v7x TensorCores;
        # on single-TC v5e/v6e the one extra grid step is ~0.35us (negligible).
        tm = max(8, min(block_m, _round_up(pl.cdiv(Nz, 2), 8)))

        # Column tile: multiple of lcm(H, 128) -> the (Dz, TN) weight tile is
        # exactly periodic (one tile reused for every column block) and the
        # output stores are lane-dense.  Sized from the VMEM budget.
        lcm = math.lcm(H, 128)
        budget = _vmem_budget_bytes()
        zsz = jnp.dtype(z.dtype).itemsize
        wsz = jnp.dtype(compute_dtype).itemsize
        osz = jnp.dtype(out_dtype).itemsize
        # per-step VMEM ~ 2x z tile + 2x weight tile + 2x xb tile + 2x out tile
        avail = budget - 2 * tm * Dz * zsz
        tn_max = avail // (2 * Dz * wsz + 2 * 4 + 2 * tm * osz)
        tn = max(lcm, (tn_max // lcm) * lcm)
        tn = min(tn, _round_up(NxH, lcm))

        n_row = pl.cdiv(Nz, tm)
        n_col = pl.cdiv(NxH, tn)

        # ---- small per-call prep (tiny tensors only) ----------------------
        # Folded x-contribution + bias, padded (cheaply) to whole column tiles.
        xb = (x.astype(jnp.float32) @ wx + bf).reshape(1, NxH)
        xb = jnp.pad(xb, ((0, 0), (0, n_col * tn - NxH)))
        # Periodic weight tile (Dz, TN): column t holds Wz[:, t % H].
        wz_tile = jnp.tile(wz, (1, tn // H))

        out2d = pl.pallas_call(
            kernel,
            # Unpadded output: Pallas masks the partial edge tiles, so there is
            # no post-kernel slice/copy of the (large) output.
            out_shape=jax.ShapeDtypeStruct((Nz, NxH), out_dtype),
            grid=(n_row, n_col),
            in_specs=[
                pl.BlockSpec((tm, Dz), lambda i, j: (i, 0)),    # z row tile
                pl.BlockSpec((Dz, tn), lambda i, j: (0, 0)),    # resident weight tile
                pl.BlockSpec((1, tn), lambda i, j: (0, j)),     # folded x@Wx + b
            ],
            out_specs=pl.BlockSpec((tm, tn), lambda i, j: (i, j)),
            compiler_params=pltpu.CompilerParams(
                dimension_semantics=("parallel", "parallel"),   # megacore sharding
                vmem_limit_bytes=int(budget),
            ),
        )(z, wz_tile, xb)

        # Contiguous row-major reshape -> torch's (Nz, Nx, heads) layout.
        return out2d.reshape(Nz, Nx, H)

    return forward


if __name__ == "__main__":
    # Small shapes consistent with the module's forward:
    #   z = node embeddings, x = batch feature rows, Linear(in=Dz+Dx, out=heads).
    Nz, Dz = 200, 32
    Nx, Dx = 64, 16
    heads = 2                      # MLP([input_size, heads]) -> out dim = heads
    input_size = Dz + Dx

    key = jax.random.PRNGKey(0)
    kz, kx, kw, kb = jax.random.split(key, 4)
    z = jax.random.normal(kz, (Nz, Dz), dtype=jnp.float32)
    x = jax.random.normal(kx, (Nx, Dx), dtype=jnp.float32)
    w = 0.05 * jax.random.normal(kw, (input_size, heads), dtype=jnp.float32)
    b = 0.01 * jax.random.normal(kb, (heads,), dtype=jnp.float32)

    fwd = make_node_aggr_mlp(w, b, heads=heads, z_dim=Dz)   # f32 compute & output
    out = jax.block_until_ready(fwd(z, x))

    # Pure-JAX reference of the torch forward.
    z_rep = jnp.broadcast_to(z[:, None, :], (Nz, Nx, Dz))   # repeat_interleave(dim=1)
    x_rep = jnp.broadcast_to(x[None, :, :], (Nz, Nx, Dx))   # x.repeat(Nz, 1, 1)
    ref = jnp.concatenate([z_rep, x_rep], axis=-1) @ w + b  # (Nz, Nx, heads)

    assert out.shape == (Nz, Nx, heads)
    err = float(jnp.max(jnp.abs(out - ref)))
    assert jnp.allclose(out, ref, atol=2e-3, rtol=2e-3), err
    print("KERNEL_OK")
</pallas_src>

<mosaic_0001>
module attributes {stable_mosaic.version = 11 : i64} {
  func.func @_node_aggr_kernel(%arg0: i32, %arg1: i32, %arg2: memref<104x32xf32, #tpu.memory_space<vmem>>, %arg3: memref<32x128xf32, #tpu.memory_space<vmem>>, %arg4: memref<1x128xf32, #tpu.memory_space<vmem>>, %arg5: memref<104x128xf32, #tpu.memory_space<vmem>>) attributes {dimension_semantics = [#tpu.dimension_semantics<parallel>, #tpu.dimension_semantics<parallel>], iteration_bounds = array<i64: 2, 1>, scalar_prefetch = 0 : i64, scratch_operands = 0 : i64, tpu.core_type = #tpu.core_type<tc>, window_params = [{transform_indices = @transform_0, window_bounds = array<i64: 104, 32>}, {pipeline_mode = #tpu.pipeline_mode<synchronous>, transform_indices = @transform_1, window_bounds = array<i64: 32, 128>}, {transform_indices = @transform_2, window_bounds = array<i64: 1, 128>}, {transform_indices = @transform_3, window_bounds = array<i64: 104, 128>}]} {
    %c0 = arith.constant 0 : index
    %c0_0 = arith.constant 0 : index
    %0 = vector.load %arg2[%c0, %c0_0] : memref<104x32xf32, #tpu.memory_space<vmem>>, vector<104x32xf32>
    %c0_1 = arith.constant 0 : index
    %c0_2 = arith.constant 0 : index
    %1 = vector.load %arg3[%c0_1, %c0_2] : memref<32x128xf32, #tpu.memory_space<vmem>>, vector<32x128xf32>
    %cst = arith.constant dense<0.000000e+00> : vector<104x128xf32>
    %2 = tpu.matmul %0, %1, %cst {dimension_numbers = #tpu.dot_dimension_numbers<[1], [0], [0], [1], [0, 0, 1, 1], [], []>} : vector<104x32xf32>, vector<32x128xf32>, vector<104x128xf32> -> vector<104x128xf32>
    %c0_3 = arith.constant 0 : index
    %c0_4 = arith.constant 0 : index
    %3 = vector.load %arg4[%c0_3, %c0_4] : memref<1x128xf32, #tpu.memory_space<vmem>>, vector<1x128xf32>
    %4 = vector.broadcast %3 : vector<1x128xf32> to vector<104x128xf32>
    %5 = arith.addf %2, %4 : vector<104x128xf32>
    %c0_5 = arith.constant 0 : index
    %c0_6 = arith.constant 0 : index
    %6 = vector.load %arg5[%c0_5, %c0_6] : memref<104x128xf32, #tpu.memory_space<vmem>>, vector<104x128xf32>
    tpu.vector_store %arg5[%c0_5, %c0_6], %5 {strides = array<i32>} : memref<104x128xf32, #tpu.memory_space<vmem>>, vector<104x128xf32>,
    return
  }
  func.func @transform_0(%arg0: i32, %arg1: i32) -> (i32, i32) {
    %c0_i32 = arith.constant 0 : i32
    %c0_i32_0 = arith.constant 0 : i32
    return %arg0, %c0_i32 : i32, i32
  }
  func.func @transform_1(%arg0: i32, %arg1: i32) -> (i32, i32) {
    %c0_i32 = arith.constant 0 : i32
    %c0_i32_0 = arith.constant 0 : i32
    %c0_i32_1 = arith.constant 0 : i32
    return %c0_i32, %c0_i32_0 : i32, i32
  }
  func.func @transform_2(%arg0: i32, %arg1: i32) -> (i32, i32) {
    %c0_i32 = arith.constant 0 : i32
    %c0_i32_0 = arith.constant 0 : i32
    return %c0_i32, %arg1 : i32, i32
  }
  func.func @transform_3(%arg0: i32, %arg1: i32) -> (i32, i32) {
    %c0_i32 = arith.constant 0 : i32
    return %arg0, %arg1 : i32, i32
  }
}

</mosaic_0001>

<bundles_post_ra>
// kernel: tpu_custom_call.1
= control target key start
LH: loop header
LB: loop body
LE: loop exit
PB: predicated region body
PF: predicated region fallthrough
CT: control target
= control target key end

     0   :  { %8 = vsyncpa [#allocation3], 0  ;;  %s851_s0 = inlined_call_operand.vmem [shape: f32[200,32], index: 0, kind: input, shape index: {}]   ;;  %s852_s1 = inlined_call_operand.vmem [shape: f32[32,128], index: 1, kind: input, shape index: {}]   ;;  %s853_s2 = inlined_call_operand.vmem [shape: f32[1,128], index: 2, kind: input, shape index: {}]   ;;  %s854_s3 = inlined_call_operand.hbm [shape: f32[200,128], index: 3, kind: output, shape index: {}]  }
   0x1   :  { %10 = vsyncpa [#allocation3 + $0x1], 0  ;;  %s674_s12 = smov 0   ;;  %s676_s13 = smov 0  }
   0x2   :  { %s678_s14 = smov 0   ;;  %s680_s15 = smov 0  }
   0x3   :  { %s682_s16 = smov 0   ;;  %s684_s17 = smov 0  }
   0x4 LB: > { %s462_s18 = sadd.s32 4294967295, %s649_s17   ;;  %s463_s19 = sadd.s32 4294967294, %s649_s17   ;;  %s649_s17 = sphi %s684_s17, %s16_s17   ;;  %s645_s16 = sphi %s682_s16, %s862_s16   ;;  %s641_s15 = sphi %s680_s15, %s861_s15   ;;  %s637_s14 = sphi %s678_s14, %s860_s14   ;;  %s633_s13 = sphi %s676_s13, %s859_s13   ;;  %s629_s12 = sphi %s674_s12, %s858_s12  }
   0x5   : > { %s28_s20 = sadd.s32 1, %s645_s16  ;;  %s110_s21 = sadd.s32 1, %s637_s14 }
   0x6   : > { %p30_p0 = scmp.ge.s32.totalorder %s28_s20, 2  ;;  %p120_p1 = scmp.ne.s32.totalorder %s637_s14, %s633_s13 }
   0x7   : > { %p121_p2 = scmp.eq.s32.totalorder %s462_s18, 1  ;;  %p126_p3 = scmp.ne.s32.totalorder %s633_s13, %s629_s12 }
   0x8   : > { %s864_s20 = smov (%p30_p0, %s28_s20), 0  ;;  %p127_p5 = scmp.eq.s32.totalorder %s463_s19, 1 }
   0x9   : > { %p714_p4 = por %p121_p2, %p120_p1  ;;  %s105_s23 = ssub.s32 %s645_s16, %s864_s20 }
   0xa   : > { %p467_p6 = scmp.ge.s32.totalorder %s649_s17, 1  ;;  %p108_p7 = scmp.eq.s32.totalorder %s105_s23, 0 }
   0xb   : > { %p721_p8 = por %p127_p5, %p126_p3  ;;  %p171_p9 = scmp.lt.s32.totalorder %s649_s17, 3 }
   0xc   : > { %s727_s25 = scalar_select %p108_p7, %s637_s14, %s110_s21  }
   0xd   : > { %p172_p10 = pnand %p467_p6, %p171_p9 }
   0xe   : > { %s736_s30 = smul.u32 (!%p172_p10), 13, %s641_s15  ;;  %s199_s19 = sand.u32 (!%p172_p10), 1, %s633_s13  }
   0xf   : > { %175 = sbr.rel (%p172_p10) target bundleno = 219 (0xdb), region = 32  ;;  %s785_s28 = scalar_lea.sflag (!%p172_p10), [#allocation3], %s199_s19 }
  0x10   : > { %p207_p11 = scmp.lt.s32.totalorder (!%p172_p10), %s736_s30, 24  ;;  %s502_s21 = smul.u32 (!%p172_p10), 104, %s199_s19 }
  0x12   : > { %s768_s27 = scalar_lea.vmem (!%p172_p10), [#allocation2], %s502_s21 }
  0x14   : > { %v240_v0 = vld [vmem:[%s852_s1 + $0x18] sm:$0xff]  ;;  %v239_v1 = vld [vmem:[%s852_s1 + $0x10] sm:$0xff]  ;;  %v238_v2 = vld [vmem:[%s852_s1 + $0x8] sm:$0xff]  ;;  %s208_s8 = scalar_select %p207_p11, %s736_s30, 24  ;;  %vm245_vm0 = vcmask 261120  }
  0x15   : > { %491 = vmatpush.msra.mxu2 %v240_v0  ;;  %492 = vmatpush.msra.mxu3 %v240_v0  ;;  %v237_v3 = vld [vmem:[%s852_s1] sm:$0xff]  ;;  %s363_s29 = ssub.s32 (%p714_p4), 25, %s736_s30 }
  0x16   : > { %297 = vmatpush.msra.mxu0 %v240_v0  ;;  %490 = vmatpush.msra.mxu1 %v240_v0  ;;  %s468_s9 = sshll.u32 %s208_s8, 3  ;;  %v559_v17 = vld [vmem:[%s853_s2] ss:$0 sm:$0xff]  ;;  %p364_p12 = scmp.lt.s32.totalorder (%p714_p4), %s363_s29, 13 }
  0x17   : > { %494 = vmatpush.msra.mxu2 %v239_v1  ;;  %495 = vmatpush.msra.mxu3 %v239_v1  ;;  %s210_s18 = scalar_lea.vmem %s851_s0, %s468_s9 }
  0x18   : > { %298 = vmatpush.msra.mxu0 %v239_v1  ;;  %493 = vmatpush.msra.mxu1 %v239_v1  ;;  %v230_v4 = vld [vmem:[%s210_s18 + $0x30] sm:$0xff]  ;;  %v224_v6 = vld [vmem:[%s210_s18] sm:$0xff]  ;;  %v227_v7 = vld [vmem:[%s210_s18 + $0x18] sm:$0xff] }
  0x19   : > { %497 = vmatpush.msra.mxu2 %v238_v2  ;;  %498 = vmatpush.msra.mxu3 %v238_v2  ;;  %v234_v5 = vld [vmem:[%s210_s18 + $0x50] sm:$0xff]  ;;  %v231_v8 = vld [vmem:[%s210_s18 + $0x38] sm:$0xff]  ;;  %v225_v10 = vld [vmem:[%s210_s18 + $0x8] sm:$0xff] }
  0x1a   : > { %299 = vmatpush.msra.mxu0 %v238_v2  ;;  %496 = vmatpush.msra.mxu1 %v238_v2  ;;  %v235_v9 = vld [vmem:[%s210_s18 + $0x58] sm:$0xff]  ;;  %v228_v11 = vld [vmem:[%s210_s18 + $0x20] sm:$0xff]  ;;  %v226_v14 = vld [vmem:[%s210_s18 + $0x10] sm:$0xff] }
  0x1b   : > { %500 = vmatpush.msra.mxu2 %v237_v3  ;;  %501 = vmatpush.msra.mxu3 %v237_v3  ;;  %v232_v12 = vld [vmem:[%s210_s18 + $0x40] sm:$0xff]  ;;  %v229_v15 = vld [vmem:[%s210_s18 + $0x28] sm:$0xff] }
  0x1c   : > { %300 = vmatpush.msra.mxu0 %v237_v3  ;;  %499 = vmatpush.msra.mxu1 %v237_v3  ;;  %v236_v13 = vld [vmem:[%s210_s18 + $0x60] sm:$0xff]  ;;  %v233_v16 = vld [vmem:[%s210_s18 + $0x48] sm:$0xff] }
  0x1d   : > { %475 = vmatmul.msk.f32.vlgmr.msra.gmra.mxu2 %vm245_vm0, %v230_v4  ;;  %479 = vmatmul.msk.f32.vlgmr.msra.gmra.mxu3 %vm245_vm0, %v234_v5 }
  0x1e   : > { %469 = vmatmul.msk.f32.vlgmr.msra.gmra.mxu0 %vm245_vm0, %v224_v6  ;;  %472 = vmatmul.msk.f32.vlgmr.msra.gmra.mxu1 %vm245_vm0, %v227_v7 }
  0x25   : > { %476 = vmatmul.msk.f32.gmra.mxu2 %vm245_vm0, %v231_v8  ;;  %480 = vmatmul.msk.f32.gmra.mxu3 %vm245_vm0, %v235_v9 }
  0x26   : > { %470 = vmatmul.msk.f32.gmra.mxu0 %vm245_vm0, %v225_v10  ;;  %473 = vmatmul.msk.f32.gmra.mxu1 %vm245_vm0, %v228_v11 }
  0x2d   : > { %477 = vmatmul.msk.f32.gmra.mxu2 %vm245_vm0, %v232_v12  ;;  %481 = vmatmul.msk.f32.gmra.mxu3 %vm245_vm0, %v236_v13 }
  0x2e   : > { %471 = vmatmul.msk.f32.gmra.mxu0 %vm245_vm0, %v226_v14  ;;  %474 = vmatmul.msk.f32.gmra.mxu1 %vm245_vm0, %v229_v15 }
  0x35   : > { %478 = vmatmul.msk.f32.gmra.mxu2 %vm245_vm0, %v233_v16 }
  0x9b   : > { %v302_v18 = vpop.f32.mrf.mxu0  ;;  %v311_v19 = vpop.f32.mrf.mxu1 }
  0x9c   : > { %v303_v20 = vadd.f32 %v559_v17, %v302_v18  ;;  %v312_v21 = vadd.f32 %v559_v17, %v311_v19 }
  0x9e   : > { %341 = vst [vmem:[%s768_s27] sm:$0xff] %v303_v20 }
  0x9f   : > { %344 = vst [vmem:[%s768_s27 + $0x18] sm:$0xff] %v312_v21 }
  0xa0   : > { %v320_v22 = vpop.f32.mrf.mxu2  ;;  %v332_v23 = vpop.f32.mrf.mxu3 }
  0xa1   : > { %v321_v24 = vadd.f32 %v559_v17, %v320_v22  ;;  %v333_v25 = vadd.f32 %v559_v17, %v332_v23 }
  0xa3   : > { %347 = vst [vmem:[%s768_s27 + $0x30] sm:$0xff] %v321_v24  ;;  %v305_v26 = vpop.f32.mrf.mxu0  ;;  %v314_v27 = vpop.f32.mrf.mxu1 }
  0xa4   : > { %351 = vst [vmem:[%s768_s27 + $0x50] sm:$0xff] %v333_v25  ;;  %v306_v28 = vadd.f32 %v559_v17, %v305_v26  ;;  %v315_v29 = vadd.f32 %v559_v17, %v314_v27 }
  0xa6   : > { %342 = vst [vmem:[%s768_s27 + $0x8] sm:$0xff] %v306_v28 }
  0xa7   : > { %345 = vst [vmem:[%s768_s27 + $0x20] sm:$0xff] %v315_v29 }
  0xa8   : > { %v323_v30 = vpop.f32.mrf.mxu2  ;;  %v335_v31 = vpop.f32.mrf.mxu3 }
  0xa9   : > { %v324_v32 = vadd.f32 %v559_v17, %v323_v30  ;;  %v336_v33 = vadd.f32 %v559_v17, %v335_v31 }
  0xab   : > { %348 = vst [vmem:[%s768_s27 + $0x38] sm:$0xff] %v324_v32  ;;  %v308_v34 = vpop.f32.mrf.mxu0  ;;  %v317_v35 = vpop.f32.mrf.mxu1 }
  0xac   : > { %352 = vst [vmem:[%s768_s27 + $0x58] sm:$0xff] %v336_v33  ;;  %v309_v36 = vadd.f32 %v559_v17, %v308_v34  ;;  %v318_v37 = vadd.f32 %v559_v17, %v317_v35 }
  0xae   : > { %343 = vst [vmem:[%s768_s27 + $0x10] sm:$0xff] %v309_v36 }
  0xaf   : > { %346 = vst [vmem:[%s768_s27 + $0x28] sm:$0xff] %v318_v37 }
  0xb0   : > { %v326_v38 = vpop.f32.mrf.mxu2  ;;  %v338_v39 = vpop.f32.mrf.mxu3 }
  0xb1   : > { %v327_v40 = vadd.f32 %v559_v17, %v326_v38  ;;  %v339_v41 = vadd.f32 %v559_v17, %v338_v39 }
  0xb3   : > { %349 = vst [vmem:[%s768_s27 + $0x40] sm:$0xff] %v327_v40 }
  0xb4   : > { %353 = vst [vmem:[%s768_s27 + $0x60] sm:$0xff] %v339_v41 }
  0xb7   : > { %361 = sbr.rel (!%p714_p4) target bundleno = 219 (0xdb), region = 36 }
  0xb8   : > { %v329_v42 = vpop.f32.mrf.mxu2 }
  0xb9   : > { %v330_v43 = vadd.f32 %v559_v17, %v329_v42 }
  0xbb   : > { %350 = vst [vmem:[%s768_s27 + $0x48] sm:$0xff] %v330_v43 }
  0xbc   : > { %s866_s29 = smov (!%p364_p12, %s363_s29), 13 }
  0xbd   : > { %s482_s4 = sshll.u32 %s866_s29, 3 }
  0xbe   : > { %s367_s5 = ssub.s32 104, %s482_s4 }
  0xbf   : > { %s368_s6 = sshll.u32 %s367_s5, 4 }
  0xc0   : > { %369 = vsyncadd %s785_s28, %s368_s6  ;;  %p794_p13 = scmp.ne.s32.totalorder %s482_s4, 0  ;;  %s489_s22 = smul.u32 104, %s641_s15 }
  0xc1   : > { %s375_s8 = sshll.u32 %s768_s27, 4  ;;  %s486_s30 = sshll.u32 %s866_s29, 7  ;;  %s804_s8 = int_to_ptr.vmem [resolvable:$true] %s375_s8 }
  0xc2   : > { %s373_s11 = scalar_lea.hbm %s854_s3, %s489_s22  ;;  %s560_s19 = sshra.s32 %s804_s8, 4  ;;  %s561_s19 = int_to_ptr.vmem [resolvable:$true] %s560_s19 }
  0xc3   : > { %s377_s18 = sshll.u32 %s373_s11, 4  ;;  %s562_s21 = sshrl.u32 %s486_s30, 4  ;;  %s806_s18 = int_to_ptr.hbm [resolvable:$true] %s377_s18 }
  0xc4   : > { %s567_s23 = scalar_lea.vmem %s561_s19, %s562_s21  ;;  %s651_s15 = smov [#allocation2]  }
  0xc5   : > { %p568_p0 = scmp.ne.s32.totalorder %s561_s19, %s567_s23  ;;  %s571_s26 = scalar_lea.vmem %s651_s15, 208 }
  0xc6   : > { %p573_p3 = scmp.lt.s32.totalorder %s571_s26, %s567_s23 }
  0xc7   : > { %p569_p1 = pnand %p568_p0, %p794_p13 }
  0xc9   : > { %p570_p2 = pneg %p569_p1 }
  0xcb   : > { %p575_p4 = pnand %p573_p3, %p570_p2 }
  0xcd   : > { %578 = shalt.err (!%p575_p4)
}
  0xce   : > { %s579_s27 = sshra.s32 %s806_s18, 4  ;;  %s590_s22 = scalar_lea.hbm %s854_s3, 200  ;;  %s580_s27 = int_to_ptr.hbm [resolvable:$true] %s579_s27 }
  0xcf   : > { %s586_s4 = scalar_lea.hbm %s580_s27, %s562_s21  ;;  %p591_p9 = scmp.lt.s32.totalorder %s580_s27, %s854_s3 }
  0xd0   : > { %p587_p5 = scmp.ne.s32.totalorder %s580_s27, %s586_s4  ;;  %p592_p10 = scmp.lt.s32.totalorder %s590_s22, %s586_s4 }
  0xd2   : > { %p588_p6 = pnand %p587_p5, %p794_p13  ;;  %p593_p11 = por %p592_p10, %p591_p9 }
  0xd4   : > { %p589_p7 = pneg %p588_p6 }
  0xd6   : > { %p594_p12 = pnand %p593_p11, %p589_p7 }
  0xd8   : > { %597 = shalt.err (!%p594_p12)
}
  0xd9   : > { %s652_s11 = smov 128   ;;  %s653_s19 = smov 8  }
  0xda   : > { %383 = dma.vmem_to_hbm [thread:$0]  (%p794_p13), %s804_s8, %s486_s30, %s806_s18, %s785_s28, %s652_s11, %s652_s11, %s653_s19  }
  0xdb PF: > { %p508_p0 = scmp.ge.s32.totalorder %s649_s17, 2  ;;  %s392_s21 = sand.u32 1, %s629_s12  }
  0xdc   : > { %s393_s23 = scalar_lea.sflag [#allocation3], %s392_s21 }
  0xdd   : > { %p505_p1 = pnand %p508_p0, %p721_p8 }
  0xdf   : > { %p506_p2 = pneg %p505_p1 }
  0xe1   : > { %624 = dma.done.wait (%p506_p2), %s393_s23, 1664  }
  0xe2   : > { %626 = vsyncadd (%p506_p2), %s393_s23, 4294965632  ;;  %s16_s17 = sadd.s32 1, %s649_s17   ;;  %s858_s12 = smov %s633_s13 }
  0xe3   : > { %p13_p3 = scmp.ge.s32.totalorder %s16_s17, 4   ;;  %s859_s13 = smov %s637_s14 }
  0xe4   : > { %s860_s14 = smov %s727_s25  ;;  %s861_s15 = smov %s645_s16 }
  0xe5   : > { %s862_s16 = smov %s864_s20  ;;  %15 = sbr.rel (!%p13_p3) target bundleno = 4 (0x4), region = 70 }
  0xea   :  { %399 = vsyncpa [#allocation3], 1 }
  0xeb   :  { %401 = vsyncpa [#allocation3 + $0x1], 1 }

</bundles_post_ra>
